<compile_context>
chip_gen: v7x
topology: tpu7x:2x2x1
jax: 0.10.0
libtpu: 0.0.40
codegen_flags: <defaults>
</compile_context>

<pallas_src>
import jax
import jax.numpy as jnp
from jax.experimental import pallas as pl
from jax.experimental.pallas import tpu as pltpu


def _round_up(x: int, m: int) -> int:
    return ((x + m - 1) // m) * m


# ---------------------------------------------------------------------------
# Kernels
# ---------------------------------------------------------------------------

def _make_single_pass_kernel(n_rows: int, n_classes: int, block_rows: int):
    """num_c_blocks == 1: whole class dim in one tile, plain softmax CE per row."""
    num_row_blocks = pl.cdiv(n_rows, block_rows)
    needs_row_mask = (num_row_blocks * block_rows != n_rows)

    def kernel(logits_ref, targets_ref, loss_ref):
        x = logits_ref[...].astype(jnp.float32)            # (block_rows, C)
        tgt = targets_ref[...]                             # (block_rows, 1) int32
        local = jax.lax.broadcasted_iota(jnp.int32, x.shape, 1)

        m = jnp.max(x, axis=-1, keepdims=True)
        lse = m + jnp.log(jnp.sum(jnp.exp(x - m), axis=-1, keepdims=True))
        t = jnp.sum(jnp.where(local == tgt, x, jnp.float32(0.0)),
                    axis=-1, keepdims=True)
        per_row = lse - t                                  # (block_rows, 1)

        if needs_row_mask:
            row = (pl.program_id(0) * block_rows
                   + jax.lax.broadcasted_iota(jnp.int32, per_row.shape, 0))
            per_row = jnp.where(row < n_rows, per_row, jnp.float32(0.0))

        # partial sum for this row block (lane-dim already 1; one store per block)
        loss_ref[...] = jnp.sum(per_row, axis=0, keepdims=True)

    return kernel


def _make_online_kernel(n_rows: int, n_classes: int, block_rows: int, tile_c: int,
                        num_c_blocks: int):
    """Class-tiled flash-style (online softmax) cross entropy."""
    num_row_blocks = pl.cdiv(n_rows, block_rows)
    needs_row_mask = (num_row_blocks * block_rows != n_rows)
    needs_col_mask = (num_c_blocks * tile_c != n_classes)

    def kernel(logits_ref, targets_ref, loss_ref, m_ref, l_ref, t_ref):
        cb = pl.program_id(1)

        @pl.when(cb == 0)
        def _init():
            m_ref[...] = jnp.full((block_rows, 1), -jnp.inf, jnp.float32)
            l_ref[...] = jnp.zeros((block_rows, 1), jnp.float32)
            t_ref[...] = jnp.zeros((block_rows, 1), jnp.float32)

        x = logits_ref[...].astype(jnp.float32)            # (block_rows, tile_c)
        # tile-local column iota vs. shifted scalars (no global col = cb*tile_c + iota add)
        local = jax.lax.broadcasted_iota(jnp.int32, (block_rows, tile_c), 1)
        tgt_local = targets_ref[...] - cb * tile_c         # (block_rows, 1)

        # Target-logit accumulation: overhang columns have local >= C - cb*tile_c which a
        # valid target (< C) can never equal, so the unmasked x is safe here.
        t_ref[...] += jnp.sum(jnp.where(local == tgt_local, x, jnp.float32(0.0)),
                              axis=-1, keepdims=True)

        def update_stats(xv):
            m_prev = m_ref[...]
            m_new = jnp.maximum(m_prev, jnp.max(xv, axis=-1, keepdims=True))
            # NOTE: exp(m_prev - m_new) is NaN if an entire first class tile of a row is
            # -inf (user-supplied -inf logits) -- standard flash-softmax hazard; finite
            # logits are assumed (matches nn.CrossEntropyLoss usage).
            alpha = jnp.exp(m_prev - m_new)
            l_ref[...] = alpha * l_ref[...] + jnp.sum(jnp.exp(xv - m_new),
                                                      axis=-1, keepdims=True)
            m_ref[...] = m_new

        if needs_col_mask:
            # Only the LAST class block pays for the overhang mask.
            @pl.when(cb < num_c_blocks - 1)
            def _no_mask():
                update_stats(x)

            @pl.when(cb == num_c_blocks - 1)
            def _masked():
                rem = n_classes - cb * tile_c              # scalar
                update_stats(jnp.where(local < rem, x, -jnp.inf))
        else:
            update_stats(x)

        @pl.when(cb == num_c_blocks - 1)
        def _finalize():
            per_row = m_ref[...] + jnp.log(l_ref[...]) - t_ref[...]
            if needs_row_mask:
                row = (pl.program_id(0) * block_rows
                       + jax.lax.broadcasted_iota(jnp.int32, per_row.shape, 0))
                per_row = jnp.where(row < n_rows, per_row, jnp.float32(0.0))
            loss_ref[...] = jnp.sum(per_row, axis=0, keepdims=True)

    return kernel


# ---------------------------------------------------------------------------
# Tiling heuristics
# ---------------------------------------------------------------------------

def _choose_tiles(n: int, c: int, itemsize: int, target_block_bytes: int):
    """Pick (block_rows, tile_c) so a logits tile is ~target_block_bytes."""
    row_bytes = c * itemsize
    # bf16 vregs pack [16, 128]; f32 pack [8, 128]
    min_rows = 16 if itemsize < 4 else 8

    if min_rows * row_bytes <= target_block_bytes:
        # Small / medium vocab: take the whole class dim, many rows per tile.
        tile_c = c
        block_rows = max(min_rows, (target_block_bytes // row_bytes) // 8 * 8)
        if n <= min_rows:
            block_rows = n                                   # single full-extent block
        else:
            # Keep >= 2 row blocks so the "parallel" row axis can split across the two
            # TensorCores on v7x (no-op on v5e/v6e).
            half = _round_up(pl.cdiv(n, 2), 8)
            block_rows = max(8, min(block_rows, half))
    else:
        # Large vocab: tile the class dim (online softmax). 32 rows keeps bf16 sublanes
        # full and halves the number of tiny target / finalize steps vs. 8 rows.
        block_rows = n if n <= 32 else 32
        tile_c = max(128, (target_block_bytes // (block_rows * itemsize)) // 128 * 128)
        tile_c = min(tile_c, _round_up(c, 128))
        if tile_c >= c:
            tile_c = c                                       # single-pass path
        elif c % tile_c != 0:
            # Prefer a tile_c that divides C (no overhang mask at all), but never shrink
            # the tile below ~half the budget for it.
            lo = max(128, (tile_c // 2 // 128) * 128)
            for cand in range(tile_c - 128, lo - 1, -128):
                if c % cand == 0:
                    tile_c = cand
                    break
    return block_rows, tile_c


# ---------------------------------------------------------------------------
# Wrapper
# ---------------------------------------------------------------------------

def normalized_cross_entropy(logits: jax.Array, targets: jax.Array,
                             *, target_block_bytes: int = 8 << 20) -> jax.Array:
    """Pallas-computed: mean CE(logits, targets) / log(num_classes). Returns a scalar."""
    n, c = logits.shape
    itemsize = jnp.dtype(logits.dtype).itemsize
    targets2d = targets.astype(jnp.int32).reshape(n, 1)

    # Cap the per-buffer tile so 2x double-buffered tiles + scratch stay well under the
    # v7x 64 MiB physical VMEM (also fine on v5e/v6e which have 128 MiB).
    target_block_bytes = min(int(target_block_bytes), 16 << 20)

    block_rows, tile_c = _choose_tiles(n, c, itemsize, target_block_bytes)
    num_row_blocks = pl.cdiv(n, block_rows)
    num_col_blocks = pl.cdiv(c, tile_c)

    tile_bytes = block_rows * tile_c * itemsize
    vmem_limit = int(min(48 << 20, max(32 << 20, 3 * tile_bytes + (4 << 20))))

    cost = pl.CostEstimate(
        flops=6 * n * c,
        transcendentals=n * c,
        bytes_accessed=n * c * itemsize + n * 4 + num_row_blocks * 4,
    )

    if num_col_blocks == 1:
        kernel = _make_single_pass_kernel(n, c, block_rows)
        partial = pl.pallas_call(
            kernel,
            out_shape=jax.ShapeDtypeStruct((num_row_blocks, 1), jnp.float32),
            grid_spec=pltpu.PrefetchScalarGridSpec(
                num_scalar_prefetch=0,
                grid=(num_row_blocks,),
                in_specs=[
                    pl.BlockSpec((block_rows, tile_c), lambda i: (i, 0)),
                    pl.BlockSpec((block_rows, 1), lambda i: (i, 0)),
                ],
                out_specs=pl.BlockSpec((1, 1), lambda i: (i, 0)),
            ),
            compiler_params=pltpu.CompilerParams(
                dimension_semantics=("parallel",),
                vmem_limit_bytes=vmem_limit),
            cost_estimate=cost,
        )(logits, targets2d)
    else:
        kernel = _make_online_kernel(n, c, block_rows, tile_c, num_col_blocks)
        partial = pl.pallas_call(
            kernel,
            out_shape=jax.ShapeDtypeStruct((num_row_blocks, 1), jnp.float32),
            grid_spec=pltpu.PrefetchScalarGridSpec(
                num_scalar_prefetch=0,
                grid=(num_row_blocks, num_col_blocks),
                in_specs=[
                    pl.BlockSpec((block_rows, tile_c), lambda i, cb: (i, cb)),
                    pl.BlockSpec((block_rows, 1), lambda i, cb: (i, 0)),
                ],
                out_specs=pl.BlockSpec((1, 1), lambda i, cb: (i, 0)),
                scratch_shapes=[pltpu.VMEM((block_rows, 1), jnp.float32)] * 3,
            ),
            compiler_params=pltpu.CompilerParams(
                dimension_semantics=("parallel", "arbitrary"),
                vmem_limit_bytes=vmem_limit),
            cost_estimate=cost,
        )(logits, targets2d)

    # TODO(synk): ignore_index / class weights / label_smoothing of nn.CrossEntropyLoss
    # are not supported (the module uses defaults, so semantics match).
    log_c = jnp.log(jnp.float32(c))
    return jnp.sum(partial) / (jnp.float32(n) * log_c)


def _reference(logits, targets):
    logits = logits.astype(jnp.float32)
    lse = jax.nn.logsumexp(logits, axis=-1)
    tgt = jnp.take_along_axis(logits, targets[:, None].astype(jnp.int32), axis=-1)[:, 0]
    ce = jnp.mean(lse - tgt)
    return ce / jnp.log(jnp.float32(logits.shape[-1]))


if __name__ == "__main__":
    key = jax.random.PRNGKey(0)

    # --- primary check: shapes implied by the module (batch=8, num_classes=32) ---
    num_classes, batch = 32, 8
    k1, k2, key = jax.random.split(key, 3)
    logits = jax.random.normal(k1, (batch, num_classes), dtype=jnp.float32)
    targets = jax.random.randint(k2, (batch,), 0, num_classes, dtype=jnp.int32)

    out = jax.block_until_ready(normalized_cross_entropy(logits, targets))
    ref = _reference(logits, targets)
    assert jnp.allclose(out, ref, atol=1e-5, rtol=1e-5), (out, ref)

    # --- ragged row blocks, single-pass path (forced tiny tiles exercise pipelining) ---
    k1, k2, key = jax.random.split(key, 3)
    logits2 = jax.random.normal(k1, (20, 200), dtype=jnp.float32)
    targets2 = jax.random.randint(k2, (20,), 0, 200, dtype=jnp.int32)
    out2 = jax.block_until_ready(
        normalized_cross_entropy(logits2, targets2, target_block_bytes=8 * 1024))
    ref2 = _reference(logits2, targets2)
    assert jnp.allclose(out2, ref2, atol=1e-5, rtol=1e-5), (out2, ref2)

    # --- class-tiled (online softmax) path with ragged last class block ---
    out3 = jax.block_until_ready(
        normalized_cross_entropy(logits2, targets2, target_block_bytes=4 * 1024))
    assert jnp.allclose(out3, ref2, atol=1e-5, rtol=1e-5), (out3, ref2)

    # --- bf16, class-tiled path with tile_c dividing C (no overhang mask, 2 row blocks) ---
    k1, k2, key = jax.random.split(key, 3)
    logits4 = jax.random.normal(k1, (64, 512), dtype=jnp.bfloat16)
    targets4 = jax.random.randint(k2, (64,), 0, 512, dtype=jnp.int32)
    out4 = jax.block_until_ready(
        normalized_cross_entropy(logits4, targets4, target_block_bytes=8 * 1024))
    ref4 = _reference(logits4, targets4)
    assert jnp.allclose(out4, ref4, atol=1e-4, rtol=1e-4), (out4, ref4)

    print("KERNEL_OK")
</pallas_src>

<mosaic_0001>
module attributes {stable_mosaic.version = 11 : i64} {
  func.func @kernel(%arg0: i32, %arg1: memref<8x32xf32, #tpu.memory_space<vmem>>, %arg2: memref<8x1xi32, #tpu.memory_space<vmem>>, %arg3: memref<1x1xf32, #tpu.memory_space<vmem>>) attributes {dimension_semantics = [#tpu.dimension_semantics<parallel>], iteration_bounds = array<i64: 1>, scalar_prefetch = 0 : i64, scratch_operands = 0 : i64, tpu.core_type = #tpu.core_type<tc>, window_params = [{transform_indices = @transform_0, window_bounds = array<i64: 8, 32>}, {transform_indices = @transform_1, window_bounds = array<i64: 8, 1>}, {transform_indices = @transform_2, window_bounds = array<i64: 1, 1>}]} {
    %c0 = arith.constant 0 : index
    %c0_0 = arith.constant 0 : index
    %0 = vector.load %arg1[%c0, %c0_0] : memref<8x32xf32, #tpu.memory_space<vmem>>, vector<8x32xf32>
    %c0_1 = arith.constant 0 : index
    %c0_2 = arith.constant 0 : index
    %1 = vector.load %arg2[%c0_1, %c0_2] : memref<8x1xi32, #tpu.memory_space<vmem>>, vector<8x1xi32>
    %2 = tpu.iota {dimensions = array<i32: 1>} : vector<8x32xi32>
    %cst = arith.constant dense<0xFF800000> : vector<8xf32>
    %3 = vector.multi_reduction <maximumf>, %0, %cst [1] : vector<8x32xf32> to vector<8xf32>
    %4 = vector.shape_cast %3 : vector<8xf32> to vector<8x1xf32>
    %5 = vector.broadcast %4 : vector<8x1xf32> to vector<8x32xf32>
    %6 = arith.subf %0, %5 : vector<8x32xf32>
    %7 = math.exp %6 : vector<8x32xf32>
    %cst_3 = arith.constant dense<0.000000e+00> : vector<8xf32>
    %8 = vector.multi_reduction <add>, %7, %cst_3 [1] : vector<8x32xf32> to vector<8xf32>
    %9 = vector.shape_cast %8 : vector<8xf32> to vector<8x1xf32>
    %10 = math.log %9 : vector<8x1xf32>
    %11 = arith.addf %4, %10 : vector<8x1xf32>
    %12 = vector.broadcast %1 : vector<8x1xi32> to vector<8x32xi32>
    %13 = arith.cmpi eq, %2, %12 : vector<8x32xi32>
    %cst_4 = arith.constant 0.000000e+00 : f32
    %14 = vector.broadcast %cst_4 : f32 to vector<8x32xf32>
    %15 = arith.select %13, %0, %14 : vector<8x32xi1>, vector<8x32xf32>
    %cst_5 = arith.constant dense<0.000000e+00> : vector<8xf32>
    %16 = vector.multi_reduction <add>, %15, %cst_5 [1] : vector<8x32xf32> to vector<8xf32>
    %17 = vector.shape_cast %16 : vector<8xf32> to vector<8x1xf32>
    %18 = arith.subf %11, %17 : vector<8x1xf32>
    %cst_6 = arith.constant dense<0.000000e+00> : vector<1xf32>
    %19 = vector.multi_reduction <add>, %18, %cst_6 [0] : vector<8x1xf32> to vector<1xf32>
    %20 = vector.shape_cast %19 : vector<1xf32> to vector<1x1xf32>
    %c0_7 = arith.constant 0 : index
    %c0_8 = arith.constant 0 : index
    %21 = vector.load %arg3[%c0_7, %c0_8] : memref<1x1xf32, #tpu.memory_space<vmem>>, vector<1x1xf32>
    tpu.vector_store %arg3[%c0_7, %c0_8], %20 {strides = array<i32>} : memref<1x1xf32, #tpu.memory_space<vmem>>, vector<1x1xf32>,
    return
  }
  func.func @transform_0(%arg0: i32) -> (i32, i32) {
    %c0_i32 = arith.constant 0 : i32
    %c0_i32_0 = arith.constant 0 : i32
    return %arg0, %c0_i32 : i32, i32
  }
  func.func @transform_1(%arg0: i32) -> (i32, i32) {
    %c0_i32 = arith.constant 0 : i32
    %c0_i32_0 = arith.constant 0 : i32
    return %arg0, %c0_i32 : i32, i32
  }
  func.func @transform_2(%arg0: i32) -> (i32, i32) {
    %c0_i32 = arith.constant 0 : i32
    %c0_i32_0 = arith.constant 0 : i32
    return %arg0, %c0_i32 : i32, i32
  }
}

</mosaic_0001>

<bundles_post_ra>
// kernel: tpu_custom_call.1
= control target key start
LH: loop header
LB: loop body
LE: loop exit
PB: predicated region body
PF: predicated region fallthrough
CT: control target
= control target key end

     0   :  { %vm16_vm0 = vcmask 261120   ;;  %s129_s0 = inlined_call_operand.vmem [shape: f32[8,32], index: 0, kind: input, shape index: {}]   ;;  %s130_s1 = inlined_call_operand.vmem [shape: s32[8,1], index: 1, kind: input, shape index: {}]   ;;  %s131_s2 = inlined_call_operand.hbm [shape: f32[1,1], index: 2, kind: output, shape index: {}]  }
   0x1   :  { %v12_v0 = vld [vmem:[%s129_s0] sm:$0xff] }
   0x2   :  { %7 = vsyncpa [#allocation3], 0  ;;  %v17_v1 = vsel %vm16_vm0, %v12_v0, -inf  ;;  %v91_v2 = vmov 0   ;;  %v13_v3 = vld [vmem:[%s130_s1] sm:$0xff]  ;;  %v14_v7 = vlaneseq  ;;  %s92_s0 = smov [#allocation2]  }
   0x3   :  { %62 = vset.pattern.permute.xlu0 %v91_v2  ;;  %s52_s1 = sshll.u32 %s92_s0, 4  ;;  %vm44_vm2 = vcmask 0   ;;  %s53_s1 = int_to_ptr.vmem [resolvable:$true] %s52_s1 }
   0x4   :  { %18 = vmax.xlane.f32.xlu0 %v17_v1  ;;  %v15_v8 = vand.u32 127, %v14_v7  ;;  %s67_s13 = scalar_lea.vmem %s53_s1, 16  ;;  %s71_s14 = scalar_lea.vmem %s53_s1, 32 }
   0x5   :  { %p68_p0 = scmp.ne.s32.totalorder %s53_s1, %s67_s13  ;;  %p72_p1 = scmp.lt.s32.totalorder %s53_s1, %s53_s1 }
   0x6   :  { %p73_p2 = scmp.lt.s32.totalorder %s71_s14, %s67_s13 }
   0x8   :  { %p74_p3 = por %p73_p2, %p72_p1 }
   0xa   :  { %p75_p4 = pnand %p74_p3, %p68_p0 }
  0x1a   :  { %30 = vperm.xlu0 %62, %v13_v3  }
  0x91   :  { %v19_v4 = vpop.xlane.xlu0 %18 }
  0x92   :  { %v20_v5 = vsub.f32 %v12_v0, %v19_v4 }
  0x94   :  { %v21_v6 = vmul.f32 1.442695, %v20_v5 }
  0x96   :  { %63 = vpow2.f32 %v21_v6 }
  0x99   :  { %v31_v9 = vpop.permute.xlu0 %30 }
  0x9a   :  { %vm32_vm1 = vcmp.eq.s32.totalorder %v15_v8, %v31_v9 }
  0x9b   :  { %v33_v11 = vsel %vm32_vm1, %v12_v0, 0.0 }
  0x9c   :  { %v34_v13 = vsel %vm16_vm0, %v33_v11, 0.0 }
  0xa0   :  { %v64_v10 = vpop.eup %63 }
  0xa1   :  { %v23_v12 = vsel %vm16_vm0, %v64_v10, 0.0 }
  0xa2   :  { %24 = vadd.xlane.f32.xlu1 %v23_v12 }
  0xa6   :  { %35 = vadd.xlane.f32.xlu1 %v34_v13 }
 0x12f   :  { %v25_v14 = vpop.xlane.xlu1 %24 }
 0x130   :  { %65 = vlog2.f32 %v25_v14 }
 0x133   :  { %v36_v17 = vpop.xlane.xlu1 %35 }
 0x13a   :  { %v66_v15 = vpop.eup %65 }
 0x13b   :  { %v27_v16 = vmul.f32 0.6931472, %v66_v15 }
 0x13d   :  { %v28_v18 = vadd.f32 %v27_v16, %v19_v4 }
 0x13f   :  { %v37_v19 = vsub.f32 %v28_v18, %v36_v17 }
 0x141   :  { %v38_v20 = vrot.slane %v37_v19, 4 }
 0x143   :  { %v39_v21 = vadd.f32 %v38_v20, %v37_v19 }
 0x145   :  { %v40_v22 = vrot.slane %v39_v21, 2 }
 0x147   :  { %v41_v23 = vadd.f32 %v40_v22, %v39_v21 }
 0x149   :  { %v42_v24 = vrot.slane %v41_v23, 1 }
 0x14b   :  { %v43_v25 = vadd.f32 %v42_v24, %v41_v23 }
 0x14d   :  { %45 = vst.msk [vmem:[#allocation2] sm:$0x1] %vm44_vm2, %v43_v25 }
 0x14e   :  { %78 = shalt.err (!%p75_p4)
}
 0x14f   :  { %s79_s17 = scalar_lea.hbm %s131_s2, 16 }
 0x150   :  { %p80_p5 = scmp.ne.s32.totalorder %s131_s2, %s79_s17  ;;  %p83_p6 = scmp.lt.u32.totalorder %s79_s17, %s131_s2 }
 0x152   :  { %p85_p7 = pnand %p83_p6, %p80_p5 }
 0x154   :  { %88 = shalt.err (!%p85_p7)
}
 0x155   :  { %55 = dma.vmem_to_hbm [thread:$0]  %s53_s1, 16, %s131_s2, [#allocation3]  }
 0x156   :  { %89 = dma.done.wait [#allocation3], 16  }
 0x157   :  { %90 = vsyncadd [#allocation3], 4294967280 }
 0x158   :  { %59 = vsyncpa [#allocation3], 1 }

</bundles_post_ra>
